<compile_context>
chip_gen: v7x
topology: tpu7x:2x2x1
jax: 0.10.0
libtpu: 0.0.40
codegen_flags: <defaults>
</compile_context>

<pallas_src>
import jax
import jax.numpy as jnp
from jax.experimental import pallas as pl
from jax.experimental.pallas import tpu as pltpu

# ---------------- problem sizes ------------------------------------------------
B = 8            # example batch (fills all 8 sublanes of a vreg row)
IN_DIM = 64      # input_dim  (z latent size)
H1 = 256         # fixed by the module
H2 = 512         # fixed by the module
OUT_DIM = 128    # output_dim (multiple of 128 -> lane-dense output store)

_MAX_BATCH_BLOCK = 256   # batch rows per grid step when tiling large batches


# ---------------- fused Pallas kernel ------------------------------------------
def _simple_generator_kernel(z_ref, w1_ref, b1_ref, w2_ref, b2_ref,
                             w3_ref, b3_ref, o_ref):
    """y = tanh(relu(relu(z@W1+b1)@W2+b2)@W3+b3), fully fused in VMEM."""
    h = jnp.dot(z_ref[...], w1_ref[...],
                preferred_element_type=jnp.float32) + b1_ref[...]
    h = jnp.maximum(h, 0.0)

    h = jnp.dot(h, w2_ref[...],
                preferred_element_type=jnp.float32) + b2_ref[...]
    h = jnp.maximum(h, 0.0)

    y = jnp.dot(h, w3_ref[...],
                preferred_element_type=jnp.float32) + b3_ref[...]
    o_ref[...] = jnp.tanh(y)


def simple_generator(z, params):
    """z: (B, IN_DIM) f32 -> (B, OUT_DIM) f32.  One pallas_call for the MLP."""
    w1, b1, w2, b2, w3, b3 = params
    bz, in_dim = z.shape
    out_dim = w3.shape[1]

    # ---- batch tiling: whole-batch block if small, else aligned tiles ---------
    if bz <= _MAX_BATCH_BLOCK:
        tm = max(bz, 1)
        pad_b = max(-(-bz // 8) * 8, 8)          # sublane-align
        if pad_b != tm:                          # keep block == full padded array
            tm = pad_b
    else:
        tm = _MAX_BATCH_BLOCK
        pad_b = -(-bz // tm) * tm

    if pad_b != bz:
        z = jnp.pad(z, ((0, pad_b - bz), (0, 0)))

    grid = (pad_b // tm,)

    full = lambda arr: pl.BlockSpec(arr.shape, lambda i: (0,) * arr.ndim)
    in_specs = [
        pl.BlockSpec((tm, in_dim), lambda i: (i, 0)),   # z: tiled over batch
        full(w1), full(b1), full(w2), full(b2), full(w3), full(b3),
    ]
    out_specs = pl.BlockSpec((tm, out_dim), lambda i: (i, 0))

    flops = 2 * pad_b * (in_dim * H1 + H1 * H2 + H2 * out_dim)
    bytes_accessed = 4 * (pad_b * in_dim + in_dim * H1 + H1 + H1 * H2 + H2
                          + H2 * out_dim + out_dim + pad_b * out_dim)

    out = pl.pallas_call(
        _simple_generator_kernel,
        out_shape=jax.ShapeDtypeStruct((pad_b, out_dim), jnp.float32),
        grid=grid,
        in_specs=in_specs,
        out_specs=out_specs,
        compiler_params=pltpu.CompilerParams(
            dimension_semantics=("parallel",)),
        cost_estimate=pl.CostEstimate(
            flops=flops,
            transcendentals=pad_b * out_dim,
            bytes_accessed=bytes_accessed),
    )(z, w1, b1, w2, b2, w3, b3)

    return out[:bz] if pad_b != bz else out


# ---------------- deterministic parameter init ----------------------------------
def init_params(key):
    ks = jax.random.split(key, 6)

    def lin(k_w, k_b, kin, kout, s=0.05):
        w = jax.random.normal(k_w, (kin, kout), jnp.float32) * s
        b = jax.random.normal(k_b, (kout,), jnp.float32) * s
        # biases stored as (1, N): clean 2-D VMEM tiles that broadcast along
        # the sublane (batch) axis inside the kernel.
        return w, b.reshape(1, kout)

    w1, b1 = lin(ks[0], ks[1], IN_DIM, H1)
    w2, b2 = lin(ks[2], ks[3], H1, H2)
    w3, b3 = lin(ks[4], ks[5], H2, OUT_DIM)
    return (w1, b1, w2, b2, w3, b3)


# ---------------- main -----------------------------------------------------------
if __name__ == "__main__":
    key = jax.random.PRNGKey(0)
    k_param, k_z = jax.random.split(key, 2)

    params = init_params(k_param)
    z = jax.random.normal(k_z, (B, IN_DIM), jnp.float32)

    fwd = jax.jit(simple_generator)
    out = fwd(z, params)
    jax.block_until_ready(out)

    # reference check (pure JAX) to guard the fused-kernel semantics
    w1, b1, w2, b2, w3, b3 = params
    ref = jnp.tanh(
        jnp.maximum(jnp.maximum(z @ w1 + b1, 0.0) @ w2 + b2, 0.0) @ w3 + b3)
    assert out.shape == (B, OUT_DIM)
    assert jnp.max(jnp.abs(out - ref)) < 1e-5

    print("KERNEL_OK")
</pallas_src>

<mosaic_0001>
module attributes {stable_mosaic.version = 11 : i64} {
  func.func @_simple_generator_kernel(%arg0: i32, %arg1: memref<8x64xf32, #tpu.memory_space<vmem>>, %arg2: memref<64x256xf32, #tpu.memory_space<vmem>>, %arg3: memref<1x256xf32, #tpu.memory_space<vmem>>, %arg4: memref<256x512xf32, #tpu.memory_space<vmem>>, %arg5: memref<1x512xf32, #tpu.memory_space<vmem>>, %arg6: memref<512x128xf32, #tpu.memory_space<vmem>>, %arg7: memref<1x128xf32, #tpu.memory_space<vmem>>, %arg8: memref<8x128xf32, #tpu.memory_space<vmem>>) attributes {dimension_semantics = [#tpu.dimension_semantics<parallel>], iteration_bounds = array<i64: 1>, scalar_prefetch = 0 : i64, scratch_operands = 0 : i64, tpu.core_type = #tpu.core_type<tc>, window_params = [{transform_indices = @transform_0, window_bounds = array<i64: 8, 64>}, {pipeline_mode = #tpu.pipeline_mode<synchronous>, transform_indices = @transform_1, window_bounds = array<i64: 64, 256>}, {pipeline_mode = #tpu.pipeline_mode<synchronous>, transform_indices = @transform_2, window_bounds = array<i64: 1, 256>}, {pipeline_mode = #tpu.pipeline_mode<synchronous>, transform_indices = @transform_3, window_bounds = array<i64: 256, 512>}, {pipeline_mode = #tpu.pipeline_mode<synchronous>, transform_indices = @transform_4, window_bounds = array<i64: 1, 512>}, {pipeline_mode = #tpu.pipeline_mode<synchronous>, transform_indices = @transform_5, window_bounds = array<i64: 512, 128>}, {pipeline_mode = #tpu.pipeline_mode<synchronous>, transform_indices = @transform_6, window_bounds = array<i64: 1, 128>}, {transform_indices = @transform_7, window_bounds = array<i64: 8, 128>}]} {
    %c0 = arith.constant 0 : index
    %c0_0 = arith.constant 0 : index
    %0 = vector.load %arg1[%c0, %c0_0] : memref<8x64xf32, #tpu.memory_space<vmem>>, vector<8x64xf32>
    %c0_1 = arith.constant 0 : index
    %c0_2 = arith.constant 0 : index
    %1 = vector.load %arg2[%c0_1, %c0_2] : memref<64x256xf32, #tpu.memory_space<vmem>>, vector<64x256xf32>
    %cst = arith.constant dense<0.000000e+00> : vector<8x256xf32>
    %2 = tpu.matmul %0, %1, %cst {dimension_numbers = #tpu.dot_dimension_numbers<[1], [0], [0], [1], [0, 0, 1, 1], [], []>} : vector<8x64xf32>, vector<64x256xf32>, vector<8x256xf32> -> vector<8x256xf32>
    %c0_3 = arith.constant 0 : index
    %c0_4 = arith.constant 0 : index
    %3 = vector.load %arg3[%c0_3, %c0_4] : memref<1x256xf32, #tpu.memory_space<vmem>>, vector<1x256xf32>
    %4 = vector.broadcast %3 : vector<1x256xf32> to vector<8x256xf32>
    %5 = arith.addf %2, %4 : vector<8x256xf32>
    %cst_5 = arith.constant 0.000000e+00 : f32
    %6 = vector.broadcast %cst_5 : f32 to vector<8x256xf32>
    %7 = arith.maximumf %5, %6 : vector<8x256xf32>
    %c0_6 = arith.constant 0 : index
    %c0_7 = arith.constant 0 : index
    %8 = vector.load %arg4[%c0_6, %c0_7] : memref<256x512xf32, #tpu.memory_space<vmem>>, vector<256x512xf32>
    %cst_8 = arith.constant dense<0.000000e+00> : vector<8x512xf32>
    %9 = tpu.matmul %7, %8, %cst_8 {dimension_numbers = #tpu.dot_dimension_numbers<[1], [0], [0], [1], [0, 0, 1, 1], [], []>} : vector<8x256xf32>, vector<256x512xf32>, vector<8x512xf32> -> vector<8x512xf32>
    %c0_9 = arith.constant 0 : index
    %c0_10 = arith.constant 0 : index
    %10 = vector.load %arg5[%c0_9, %c0_10] : memref<1x512xf32, #tpu.memory_space<vmem>>, vector<1x512xf32>
    %11 = vector.broadcast %10 : vector<1x512xf32> to vector<8x512xf32>
    %12 = arith.addf %9, %11 : vector<8x512xf32>
    %cst_11 = arith.constant 0.000000e+00 : f32
    %13 = vector.broadcast %cst_11 : f32 to vector<8x512xf32>
    %14 = arith.maximumf %12, %13 : vector<8x512xf32>
    %c0_12 = arith.constant 0 : index
    %c0_13 = arith.constant 0 : index
    %15 = vector.load %arg6[%c0_12, %c0_13] : memref<512x128xf32, #tpu.memory_space<vmem>>, vector<512x128xf32>
    %cst_14 = arith.constant dense<0.000000e+00> : vector<8x128xf32>
    %16 = tpu.matmul %14, %15, %cst_14 {dimension_numbers = #tpu.dot_dimension_numbers<[1], [0], [0], [1], [0, 0, 1, 1], [], []>} : vector<8x512xf32>, vector<512x128xf32>, vector<8x128xf32> -> vector<8x128xf32>
    %c0_15 = arith.constant 0 : index
    %c0_16 = arith.constant 0 : index
    %17 = vector.load %arg7[%c0_15, %c0_16] : memref<1x128xf32, #tpu.memory_space<vmem>>, vector<1x128xf32>
    %18 = vector.broadcast %17 : vector<1x128xf32> to vector<8x128xf32>
    %19 = arith.addf %16, %18 : vector<8x128xf32>
    %20 = math.tanh %19 : vector<8x128xf32>
    %c0_17 = arith.constant 0 : index
    %c0_18 = arith.constant 0 : index
    %21 = vector.load %arg8[%c0_17, %c0_18] : memref<8x128xf32, #tpu.memory_space<vmem>>, vector<8x128xf32>
    tpu.vector_store %arg8[%c0_17, %c0_18], %20 {strides = array<i32>} : memref<8x128xf32, #tpu.memory_space<vmem>>, vector<8x128xf32>,
    return
  }
  func.func @transform_0(%arg0: i32) -> (i32, i32) {
    %c0_i32 = arith.constant 0 : i32
    %c0_i32_0 = arith.constant 0 : i32
    return %arg0, %c0_i32 : i32, i32
  }
  func.func @transform_1(%arg0: i32) -> (i32, i32) {
    %c0_i32 = arith.constant 0 : i32
    %c0_i32_0 = arith.constant 0 : i32
    %c0_i32_1 = arith.constant 0 : i32
    return %c0_i32, %c0_i32_0 : i32, i32
  }
  func.func @transform_2(%arg0: i32) -> (i32, i32) {
    %c0_i32 = arith.constant 0 : i32
    %c0_i32_0 = arith.constant 0 : i32
    %c0_i32_1 = arith.constant 0 : i32
    return %c0_i32, %c0_i32_0 : i32, i32
  }
  func.func @transform_3(%arg0: i32) -> (i32, i32) {
    %c0_i32 = arith.constant 0 : i32
    %c0_i32_0 = arith.constant 0 : i32
    %c0_i32_1 = arith.constant 0 : i32
    return %c0_i32, %c0_i32_0 : i32, i32
  }
  func.func @transform_4(%arg0: i32) -> (i32, i32) {
    %c0_i32 = arith.constant 0 : i32
    %c0_i32_0 = arith.constant 0 : i32
    %c0_i32_1 = arith.constant 0 : i32
    return %c0_i32, %c0_i32_0 : i32, i32
  }
  func.func @transform_5(%arg0: i32) -> (i32, i32) {
    %c0_i32 = arith.constant 0 : i32
    %c0_i32_0 = arith.constant 0 : i32
    %c0_i32_1 = arith.constant 0 : i32
    return %c0_i32, %c0_i32_0 : i32, i32
  }
  func.func @transform_6(%arg0: i32) -> (i32, i32) {
    %c0_i32 = arith.constant 0 : i32
    %c0_i32_0 = arith.constant 0 : i32
    %c0_i32_1 = arith.constant 0 : i32
    return %c0_i32, %c0_i32_0 : i32, i32
  }
  func.func @transform_7(%arg0: i32) -> (i32, i32) {
    %c0_i32 = arith.constant 0 : i32
    %c0_i32_0 = arith.constant 0 : i32
    return %arg0, %c0_i32 : i32, i32
  }
}

</mosaic_0001>

<bundles_post_ra>
// kernel: simple_generator.1
= control target key start
LH: loop header
LB: loop body
LE: loop exit
PB: predicated region body
PF: predicated region fallthrough
CT: control target
= control target key end

     0   :  { %12 = vsyncpa [#allocation3], 0  ;;  %s1259_s0 = inlined_call_operand.hbm [shape: f32[8,64], index: 0, kind: input, shape index: {}]   ;;  %s1260_s1 = inlined_call_operand.hbm [shape: f32[64,256], index: 1, kind: input, shape index: {}]   ;;  %s1261_s2 = inlined_call_operand.vmem [shape: f32[1,256], index: 2, kind: input, shape index: {}]   ;;  %s1262_s3 = inlined_call_operand.hbm [shape: f32[256,512], index: 3, kind: input, shape index: {}]   ;;  %s1263_s4 = inlined_call_operand.vmem [shape: f32[1,512], index: 4, kind: input, shape index: {}]   ;;  %s1264_s5 = inlined_call_operand.hbm [shape: f32[512,128], index: 5, kind: input, shape index: {}]   ;;  %s1265_s6 = inlined_call_operand.vmem [shape: f32[1,128], index: 6, kind: input, shape index: {}]   ;;  %s1266_s7 = inlined_call_operand.hbm [shape: f32[8,128], index: 7, kind: output, shape index: {}]  }
   0x1   :  { %13 = vsyncpa [#allocation6], 0 }
   0x2   :  { %14 = vsyncpa [#allocation9], 0 }
   0x3   :  { %15 = vsyncpa [#allocation4], 0  ;;  %s1124_s24 = smov [#allocation5]   ;;  %s1006_s28 = scalar_lea.hbm %s1260_s1, 2048 }
   0x4   :  { %s31_s25 = sshll.u32 %s1124_s24, 4  ;;  %p1007_p0 = scmp.ne.s32.totalorder %s1260_s1, %s1006_s28  ;;  %s32_s25 = int_to_ptr.vmem [resolvable:$true] %s31_s25 }
   0x5   :  { %p1010_p1 = scmp.lt.u32.totalorder %s1006_s28, %s1260_s1 }
   0x7   :  { %p1012_p2 = pnand %p1010_p1, %p1007_p0 }
   0x9   :  { %1015 = shalt.err (!%p1012_p2)
}
   0xa   :  { %s1016_s10 = scalar_lea.vmem %s32_s25, 2048  ;;  %p1021_p4 = scmp.lt.s32.totalorder %s32_s25, %s32_s25 }
   0xb   :  { %p1017_p3 = scmp.ne.s32.totalorder %s32_s25, %s1016_s10  ;;  %p1022_p5 = scmp.lt.s32.totalorder %s1016_s10, %s1016_s10 }
   0xd   :  { %p1023_p6 = por %p1022_p5, %p1021_p4 }
   0xf   :  { %p1024_p7 = pnand %p1023_p6, %p1017_p3 }
  0x11   :  { %1027 = shalt.err (!%p1024_p7)
}
  0x12   :  { %s1125_s11 = smov 256   ;;  %s1126_s12 = smov 16  }
  0x13   :  { %37 = dma.hbm_to_vmem [thread:$0]  %s1260_s1, 2048, %s32_s25, [#allocation6], %s1125_s11, %s1125_s11, %s1126_s12  }
  0x14   :  { %s1127_s15 = smov [#allocation2]   ;;  %s1128_s17 = smov [#allocation7]  }
  0x15   :  { %s22_s16 = sshll.u32 %s1127_s15, 4  ;;  %s45_s18 = sshll.u32 %s1128_s17, 4  ;;  %s23_s16 = int_to_ptr.vmem [resolvable:$true] %s22_s16  ;;  %s46_s18 = int_to_ptr.vmem [resolvable:$true] %s45_s18 }
  0x16   :  { %s1028_s21 = scalar_lea.hbm %s1259_s0, 128 }
  0x17   :  { %p1029_p8 = scmp.ne.s32.totalorder %s1259_s0, %s1028_s21  ;;  %p1032_p9 = scmp.lt.u32.totalorder %s1028_s21, %s1259_s0 }
  0x19   :  { %p1034_p10 = pnand %p1032_p9, %p1029_p8 }
  0x1b   :  { %1037 = shalt.err (!%p1034_p10)
}
  0x1c   :  { %s1038_s1 = scalar_lea.vmem %s23_s16, 128  ;;  %p1043_p12 = scmp.lt.s32.totalorder %s23_s16, %s23_s16 }
  0x1d   :  { %p1039_p11 = scmp.ne.s32.totalorder %s23_s16, %s1038_s1  ;;  %p1044_p13 = scmp.lt.s32.totalorder %s1038_s1, %s1038_s1 }
  0x1f   :  { %p1045_p0 = por %p1044_p13, %p1043_p12 }
  0x21   :  { %p1046_p1 = pnand %p1045_p0, %p1039_p11 }
  0x23   :  { %1049 = shalt.err (!%p1046_p1)
}
  0x24   :  { %25 = dma.hbm_to_vmem [thread:$0]  %s1259_s0, 128, %s23_s16, [#allocation3]  }
  0x25   :  { %s1050_s30 = scalar_lea.hbm %s1262_s3, 16384 }
  0x26   :  { %p1051_p2 = scmp.ne.s32.totalorder %s1262_s3, %s1050_s30  ;;  %p1054_p3 = scmp.lt.u32.totalorder %s1050_s30, %s1262_s3 }
  0x28   :  { %p1056_p4 = pnand %p1054_p3, %p1051_p2 }
  0x2a   :  { %1059 = shalt.err (!%p1056_p4)
}
  0x2b   :  { %s1060_s12 = scalar_lea.vmem %s46_s18, 16384  ;;  %p1065_p6 = scmp.lt.s32.totalorder %s46_s18, %s46_s18 }
  0x2c   :  { %p1061_p5 = scmp.ne.s32.totalorder %s46_s18, %s1060_s12  ;;  %p1066_p7 = scmp.lt.s32.totalorder %s1060_s12, %s1060_s12 }
  0x2e   :  { %p1067_p8 = por %p1066_p7, %p1065_p6 }
  0x30   :  { %p1068_p9 = pnand %p1067_p8, %p1061_p5 }
  0x32   :  { %1071 = shalt.err (!%p1068_p9)
}
  0x33   :  { %s1129_s0 = smov 512   ;;  %s1130_s13 = smov 32  }
  0x34   :  { %51 = dma.hbm_to_vmem [thread:$0]  %s1262_s3, 16384, %s46_s18, [#allocation6], %s1129_s0, %s1129_s0, %s1130_s13  }
  0x35   :  { %s1131_s16 = smov [#allocation8]   ;;  %s1072_s21 = scalar_lea.hbm %s1264_s5, 8192 }
  0x36   :  { %s59_s17 = sshll.u32 %s1131_s16, 4  ;;  %p1073_p10 = scmp.ne.s32.totalorder %s1264_s5, %s1072_s21  ;;  %s60_s17 = int_to_ptr.vmem [resolvable:$true] %s59_s17 }
  0x37   :  { %p1076_p11 = scmp.lt.u32.totalorder %s1072_s21, %s1264_s5 }
  0x39   :  { %p1078_p12 = pnand %p1076_p11, %p1073_p10 }
  0x3b   :  { %1081 = shalt.err (!%p1078_p12)
}
  0x3c   :  { %s1082_s1 = scalar_lea.vmem %s60_s17, 8192  ;;  %p1087_p0 = scmp.lt.s32.totalorder %s60_s17, %s60_s17 }
  0x3d   :  { %p1083_p13 = scmp.ne.s32.totalorder %s60_s17, %s1082_s1  ;;  %p1088_p1 = scmp.lt.s32.totalorder %s1082_s1, %s1082_s1 }
  0x3f   :  { %p1089_p2 = por %p1088_p1, %p1087_p0 }
  0x41   :  { %p1090_p3 = pnand %p1089_p2, %p1083_p13 }
  0x43   :  { %1093 = shalt.err (!%p1090_p3)
}
  0x44   :  { %s1132_s3 = smov 128   ;;  %s1133_s18 = smov 8  }
  0x45   :  { %65 = dma.hbm_to_vmem [thread:$0]  %s1264_s5, 8192, %s60_s17, [#allocation9], %s1132_s3, %s1132_s3, %s1133_s18  }
  0x46   :  { %1116 = dma.done.wait [#allocation3], 128  }
  0x47   :  { %1117 = vsyncadd [#allocation3], 4294967168 }
  0x48   :  { %1118 = dma.done.wait [#allocation6], 18432  }
  0x49   :  { %1119 = vsyncadd [#allocation6], 4294948864 }
  0x4a   :  { %1120 = dma.done.wait [#allocation9], 8192  }
  0x4b   :  { %1121 = vsyncadd [#allocation9], 4294959104  ;;  %v1134_v0 = vmov 0.0   ;;  %v82_v1 = vld [vmem:[#allocation5 + $0x8] sm:$0xff]  ;;  %v84_v2 = vld [vmem:[#allocation5 + $0x18] sm:$0xff]  ;;  %vm109_vm0 = vcmask 523264  }
  0x4c   :  { %177 = vmatprep.mubr.f32.mxu0 %v1134_v0  ;;  %v81_v3 = vld [vmem:[#allocation5] sm:$0xff]  ;;  %v784_v4 = vpack.c.bf16 %v84_v2, %v82_v1  ;;  %v83_v5 = vld [vmem:[#allocation5 + $0x10] sm:$0xff]  ;;  %v86_v6 = vld [vmem:[#allocation5 + $0x28] sm:$0xff]  ;;  %s1135_s8 = smov [#allocation10]  }
  0x4d   :  { %v88_v7 = vld [vmem:[#allocation5 + $0x38] sm:$0xff]  ;;  %v786_v8 = vpack.c.bf16 %v83_v5, %v81_v3  ;;  %v85_v10 = vld [vmem:[#allocation5 + $0x20] sm:$0xff]  ;;  %v87_v11 = vld [vmem:[#allocation5 + $0x30] sm:$0xff]  ;;  %s701_s9 = sshll.u32 %s1135_s8, 4  ;;  %s702_s9 = int_to_ptr.vmem [resolvable:$true] %s701_s9 }
  0x4e   :  { %v788_v9 = vpack.c.bf16 %v88_v7, %v86_v6  ;;  %v90_v12 = vld [vmem:[#allocation5 + $0x48] sm:$0xff]  ;;  %785 = vmatprep.subr.bf16.mxu0 %v784_v4  ;;  %v92_v13 = vld [vmem:[#allocation5 + $0x58] sm:$0xff]  ;;  %v790_v14 = vpack.c.bf16 %v87_v11, %v85_v10  ;;  %v89_v16 = vld [vmem:[#allocation5 + $0x40] sm:$0xff]  ;;  %s1094_s10 = scalar_lea.vmem %s702_s9, 128  ;;  %p1099_p5 = scmp.lt.s32.totalorder %s702_s9, %s702_s9 }
  0x4f   :  { %787 = vmatpush1.bf16.msra.mxu0 %v786_v8  ;;  %v792_v15 = vpack.c.bf16 %v92_v13, %v90_v12  ;;  %v91_v17 = vld [vmem:[#allocation5 + $0x50] sm:$0xff]  ;;  %v187_v18 = vld [vmem:[#allocation7 + $0x8] sm:$0xff]  ;;  %v96_v20 = vld [vmem:[#allocation5 + $0x78] sm:$0xff]  ;;  %p1095_p4 = scmp.ne.s32.totalorder %s702_s9, %s1094_s10  ;;  %p1100_p6 = scmp.lt.s32.totalorder %s1094_s10, %s1094_s10 }
  0x50   :  { %789 = vmatprep.subr.bf16.mxu0 %v788_v9  ;;  %v94_v19 = vld [vmem:[#allocation5 + $0x68] sm:$0xff]  ;;  %v186_v23 = vld [vmem:[#allocation7] sm:$0xff]  ;;  %v794_v25 = vpack.c.bf16 %v91_v17, %v89_v16  ;;  %v95_v31 = vld [vmem:[#allocation5 + $0x70] sm:$0xff] }
  0x51   :  { %v191_v21 = vld [vmem:[#allocation7 + $0x28] sm:$0xff]  ;;  %v190_v24 = vld [vmem:[#allocation7 + $0x20] sm:$0xff]  ;;  %v796_v29 = vpack.c.bf16 %v96_v20, %v94_v19  ;;  %v189_v34 = vld [vmem:[#allocation7 + $0x18] sm:$0xff]  ;;  %p1101_p7 = por %p1100_p6, %p1099_p5 }
  0x52   :  { %v800_v22 = vpack.c.bf16 %v191_v21, %v187_v18  ;;  %v802_v26 = vpack.c.bf16 %v190_v24, %v186_v23  ;;  %v195_v27 = vld [vmem:[#allocation7 + $0x48] sm:$0xff]  ;;  %v93_v30 = vld [vmem:[#allocation5 + $0x60] sm:$0xff]  ;;  %v193_v35 = vld [vmem:[#allocation7 + $0x38] sm:$0xff] }
  0x53   :  { %791 = vmatpush1.bf16.msra.mxu0 %v790_v14  ;;  %v199_v28 = vld [vmem:[#allocation7 + $0x68] sm:$0xff]  ;;  %v194_v33 = vld [vmem:[#allocation7 + $0x40] sm:$0xff]  ;;  %v798_v40 = vpack.c.bf16 %v95_v31, %v93_v30  ;;  %v864_v44 = vpack.c.bf16 %v193_v35, %v189_v34  ;;  %v188_v45 = vld [vmem:[#allocation7 + $0x10] sm:$0xff]  ;;  %p1102_p8 = pnand %p1101_p7, %p1095_p4 }
  0x54   :  { %793 = vmatprep.subr.bf16.mxu0 %v792_v15  ;;  %801 = vmatprep.subr.bf16.mxu1 %v800_v22  ;;  %v804_v32 = vpack.c.bf16 %v199_v28, %v195_v27  ;;  %v198_v36 = vld [vmem:[#allocation7 + $0x60] sm:$0xff]  ;;  %v203_v38 = vld [vmem:[#allocation7 + $0x88] sm:$0xff]  ;;  %v192_v46 = vld [vmem:[#allocation7 + $0x30] sm:$0xff] }
  0x55   :  { %803 = vmatpush1.bf16.msra.mxu1 %v802_v26  ;;  %v806_v37 = vpack.c.bf16 %v198_v36, %v194_v33  ;;  %v207_v39 = vld [vmem:[#allocation7 + $0xa8] sm:$0xff]  ;;  %v202_v42 = vld [vmem:[#allocation7 + $0x80] sm:$0xff]  ;;  %v197_v48 = vld [vmem:[#allocation7 + $0x58] sm:$0xff]  ;;  %v866_v56 = vpack.c.bf16 %v192_v46, %v188_v45 }
  0x56   :  { %805 = vmatprep.subr.bf16.mxu1 %v804_v32  ;;  %v808_v41 = vpack.c.bf16 %v207_v39, %v203_v38  ;;  %v206_v43 = vld [vmem:[#allocation7 + $0xa0] sm:$0xff]  ;;  %v211_v47 = vld [vmem:[#allocation7 + $0xc8] sm:$0xff]  ;;  %v201_v49 = vld [vmem:[#allocation7 + $0x78] sm:$0xff] }
  0x57   :  { %795 = vmatpush1.bf16.msra.mxu0 %v794_v25  ;;  %v810_v50 = vpack.c.bf16 %v206_v43, %v202_v42  ;;  %v215_v51 = vld [vmem:[#allocation7 + $0xe8] sm:$0xff]  ;;  %v210_v53 = vld [vmem:[#allocation7 + $0xc0] sm:$0xff]  ;;  %v80_v55 = vld [vmem:[#allocation2] sm:$0xff]  ;;  %v868_v59 = vpack.c.bf16 %v201_v49, %v197_v48 }
  0x58   :  { %797 = vmatprep.subr.bf16.mxu0 %v796_v29  ;;  %v812_v52 = vpack.c.bf16 %v215_v51, %v211_v47  ;;  %v214_v54 = vld [vmem:[#allocation7 + $0xe0] sm:$0xff]  ;;  %v219_v57 = vld [vmem:[#allocation7 + $0x108] sm:$0xff]  ;;  %v196_v60 = vld [vmem:[#allocation7 + $0x50] sm:$0xff] }
  0x59   :  { %807 = vmatpush1.bf16.msra.mxu1 %v806_v37  ;;  %v223_v58 = vld [vmem:[#allocation7 + $0x128] sm:$0xff]  ;;  %v200_v61 = vld [vmem:[#allocation7 + $0x70] sm:$0xff]  ;;  %v205_v62 = vld [vmem:[#allocation7 + $0x98] sm:$0xff]  ;;  %v814_v0 = vpack.c.bf16 %v214_v54, %v210_v53 }
  0x5a   :  { %809 = vmatprep.subr.bf16.mxu1 %v808_v41  ;;  %v209_v63 = vld [vmem:[#allocation7 + $0xb8] sm:$0xff]  ;;  %v816_v1 = vpack.c.bf16 %v223_v58, %v219_v57  ;;  %v218_v2 = vld [vmem:[#allocation7 + $0x100] sm:$0xff]  ;;  %v870_v4 = vpack.c.bf16 %v200_v61, %v196_v60  ;;  %v227_v5 = vld [vmem:[#allocation7 + $0x148] sm:$0xff] }
  0x5b   :  { %799 = vmatpush1.bf16.msra.mxu0 %v798_v40  ;;  %v222_v3 = vld [vmem:[#allocation7 + $0x120] sm:$0xff]  ;;  %v231_v6 = vld [vmem:[#allocation7 + $0x168] sm:$0xff]  ;;  %v872_v7 = vpack.c.bf16 %v209_v63, %v205_v62  ;;  %v204_v8 = vld [vmem:[#allocation7 + $0x90] sm:$0xff] }
  0x5c   :  { %865 = vmatprep.subr.bf16.mxu0 %v864_v44  ;;  %v208_v9 = vld [vmem:[#allocation7 + $0xb0] sm:$0xff]  ;;  %v213_v10 = vld [vmem:[#allocation7 + $0xd8] sm:$0xff]  ;;  %v818_v12 = vpack.c.bf16 %v222_v3, %v218_v2  ;;  %v820_v13 = vpack.c.bf16 %v231_v6, %v227_v5  ;;  %v226_v14 = vld [vmem:[#allocation7 + $0x140] sm:$0xff] }
  0x5d   :  { %811 = vmatpush1.bf16.msra.mxu1 %v810_v50  ;;  %v217_v11 = vld [vmem:[#allocation7 + $0xf8] sm:$0xff]  ;;  %v230_v15 = vld [vmem:[#allocation7 + $0x160] sm:$0xff]  ;;  %v874_v16 = vpack.c.bf16 %v208_v9, %v204_v8  ;;  %v235_v17 = vld [vmem:[#allocation7 + $0x188] sm:$0xff] }
  0x5e   :  { %712 = vmatmul.mubr.msk.f32.vlgmr.msra.gmra.mrb[0].mxu0 %vm109_vm0, %v80_v55  ;;  %813 = vmatprep.subr.bf16.mxu1 %v812_v52  ;;  %v239_v18 = vld [vmem:[#allocation7 + $0x1a8] sm:$0xff]  ;;  %v876_v19 = vpack.c.bf16 %v217_v11, %v213_v10  ;;  %v212_v20 = vld [vmem:[#allocation7 + $0xd0] sm:$0xff]  ;;  %v221_v22 = vld [vmem:[#allocation7 + $0x118] sm:$0xff]  ;;  %v822_v24 = vpack.c.bf16 %v230_v15, %v226_v14 }
  0x5f   :  { %867 = vmatpush1.bf16.msra.mxu0 %v866_v56  ;;  %v216_v21 = vld [vmem:[#allocation7 + $0xf0] sm:$0xff]  ;;  %v225_v23 = vld [vmem:[#allocation7 + $0x138] sm:$0xff]  ;;  %v824_v25 = vpack.c.bf16 %v239_v18, %v235_v17  ;;  %v234_v26 = vld [vmem:[#allocation7 + $0x180] sm:$0xff] }
  0x60   :  { %869 = vmatprep.subr.bf16.mxu0 %v868_v59  ;;  %v238_v27 = vld [vmem:[#allocation7 + $0x1a0] sm:$0xff]  ;;  %v878_v28 = vpack.c.bf16 %v216_v21, %v212_v20  ;;  %v243_v29 = vld [vmem:[#allocation7 + $0x1c8] sm:$0xff]  ;;  %v880_v31 = vpack.c.bf16 %v225_v23, %v221_v22  ;;  %v220_v32 = vld [vmem:[#allocation7 + $0x110] sm:$0xff] }
  0x61   :  { %815 = vmatpush1.bf16.msra.mxu1 %v814_v0  ;;  %v247_v30 = vld [vmem:[#allocation7 + $0x1e8] sm:$0xff]  ;;  %v224_v33 = vld [vmem:[#allocation7 + $0x130] sm:$0xff]  ;;  %v229_v34 = vld [vmem:[#allocation7 + $0x158] sm:$0xff]  ;;  %v826_v36 = vpack.c.bf16 %v238_v27, %v234_v26 }
  0x62   :  { %817 = vmatprep.subr.bf16.mxu1 %v816_v1  ;;  %v233_v35 = vld [vmem:[#allocation7 + $0x178] sm:$0xff]  ;;  %v828_v37 = vpack.c.bf16 %v247_v30, %v243_v29  ;;  %v242_v38 = vld [vmem:[#allocation7 + $0x1c0] sm:$0xff]  ;;  %v882_v40 = vpack.c.bf16 %v224_v33, %v220_v32  ;;  %v251_v41 = vld [vmem:[#allocation7 + $0x208] sm:$0xff] }
  0x63   :  { %871 = vmatpush1.bf16.msra.mxu0 %v870_v4  ;;  %v246_v39 = vld [vmem:[#allocation7 + $0x1e0] sm:$0xff]  ;;  %v255_v42 = vld [vmem:[#allocation7 + $0x228] sm:$0xff]  ;;  %v884_v43 = vpack.c.bf16 %v233_v35, %v229_v34  ;;  %v228_v44 = vld [vmem:[#allocation7 + $0x150] sm:$0xff] }
  0x64   :  { %873 = vmatprep.subr.bf16.mxu0 %v872_v7  ;;  %v232_v45 = vld [vmem:[#allocation7 + $0x170] sm:$0xff]  ;;  %v237_v46 = vld [vmem:[#allocation7 + $0x198] sm:$0xff]  ;;  %v830_v48 = vpack.c.bf16 %v246_v39, %v242_v38  ;;  %v832_v49 = vpack.c.bf16 %v255_v42, %v251_v41  ;;  %v250_v50 = vld [vmem:[#allocation7 + $0x200] sm:$0xff] }
  0x65   :  { %819 = vmatpush1.bf16.msra.mxu1 %v818_v12  ;;  %v241_v47 = vld [vmem:[#allocation7 + $0x1b8] sm:$0xff]  ;;  %v254_v51 = vld [vmem:[#allocation7 + $0x220] sm:$0xff]  ;;  %v886_v52 = vpack.c.bf16 %v232_v45, %v228_v44  ;;  %v259_v53 = vld [vmem:[#allocation7 + $0x248] sm:$0xff] }
  0x66   :  { %821 = vmatprep.subr.bf16.mxu1 %v820_v13  ;;  %v263_v54 = vld [vmem:[#allocation7 + $0x268] sm:$0xff]  ;;  %v888_v55 = vpack.c.bf16 %v241_v47, %v237_v46  ;;  %v236_v56 = vld [vmem:[#allocation7 + $0x190] sm:$0xff]  ;;  %v245_v58 = vld [vmem:[#allocation7 + $0x1d8] sm:$0xff]  ;;  %v834_v60 = vpack.c.bf16 %v254_v51, %v250_v50 }
  0x67   :  { %875 = vmatpush1.bf16.msra.mxu0 %v874_v16  ;;  %v240_v57 = vld [vmem:[#allocation7 + $0x1b0] sm:$0xff]  ;;  %v249_v59 = vld [vmem:[#allocation7 + $0x1f8] sm:$0xff]  ;;  %v836_v61 = vpack.c.bf16 %v263_v54, %v259_v53  ;;  %v258_v62 = vld [vmem:[#allocation7 + $0x240] sm:$0xff] }
  0x68   :  { %877 = vmatprep.subr.bf16.mxu0 %v876_v19  ;;  %v262_v63 = vld [vmem:[#allocation7 + $0x260] sm:$0xff]  ;;  %v890_v0 = vpack.c.bf16 %v240_v57, %v236_v56  ;;  %v267_v1 = vld [vmem:[#allocation7 + $0x288] sm:$0xff]  ;;  %v892_v3 = vpack.c.bf16 %v249_v59, %v245_v58  ;;  %v244_v4 = vld [vmem:[#allocation7 + $0x1d0] sm:$0xff] }
  0x69   :  { %823 = vmatpush1.bf16.msra.mxu1 %v822_v24  ;;  %v271_v2 = vld [vmem:[#allocation7 + $0x2a8] sm:$0xff]  ;;  %v248_v5 = vld [vmem:[#allocation7 + $0x1f0] sm:$0xff]  ;;  %v253_v6 = vld [vmem:[#allocation7 + $0x218] sm:$0xff]  ;;  %v838_v8 = vpack.c.bf16 %v262_v63, %v258_v62 }
  0x6a   :  { %825 = vmatprep.subr.bf16.mxu1 %v824_v25  ;;  %v257_v7 = vld [vmem:[#allocation7 + $0x238] sm:$0xff]  ;;  %v840_v9 = vpack.c.bf16 %v271_v2, %v267_v1  ;;  %v266_v10 = vld [vmem:[#allocation7 + $0x280] sm:$0xff]  ;;  %v894_v12 = vpack.c.bf16 %v248_v5, %v244_v4  ;;  %v275_v13 = vld [vmem:[#allocation7 + $0x2c8] sm:$0xff] }
  0x6b   :  { %879 = vmatpush1.bf16.msra.mxu0 %v878_v28  ;;  %v270_v11 = vld [vmem:[#allocation7 + $0x2a0] sm:$0xff]  ;;  %v279_v14 = vld [vmem:[#allocation7 + $0x2e8] sm:$0xff]  ;;  %v896_v15 = vpack.c.bf16 %v257_v7, %v253_v6  ;;  %v252_v16 = vld [vmem:[#allocation7 + $0x210] sm:$0xff] }
  0x6c   :  { %881 = vmatprep.subr.bf16.mxu0 %v880_v31  ;;  %v256_v17 = vld [vmem:[#allocation7 + $0x230] sm:$0xff]  ;;  %v261_v18 = vld [vmem:[#allocation7 + $0x258] sm:$0xff]  ;;  %v842_v20 = vpack.c.bf16 %v270_v11, %v266_v10  ;;  %v844_v21 = vpack.c.bf16 %v279_v14, %v275_v13  ;;  %v274_v22 = vld [vmem:[#allocation7 + $0x2c0] sm:$0xff] }
  0x6d   :  { %827 = vmatpush1.bf16.msra.mxu1 %v826_v36  ;;  %v265_v19 = vld [vmem:[#allocation7 + $0x278] sm:$0xff]  ;;  %v278_v23 = vld [vmem:[#allocation7 + $0x2e0] sm:$0xff]  ;;  %v898_v24 = vpack.c.bf16 %v256_v17, %v252_v16  ;;  %v283_v25 = vld [vmem:[#allocation7 + $0x308] sm:$0xff] }
  0x6e   :  { %829 = vmatprep.subr.bf16.mxu1 %v828_v37  ;;  %v287_v26 = vld [vmem:[#allocation7 + $0x328] sm:$0xff]  ;;  %v900_v27 = vpack.c.bf16 %v265_v19, %v261_v18  ;;  %v260_v28 = vld [vmem:[#allocation7 + $0x250] sm:$0xff]  ;;  %v269_v30 = vld [vmem:[#allocation7 + $0x298] sm:$0xff]  ;;  %v846_v32 = vpack.c.bf16 %v278_v23, %v274_v22 }
  0x6f   :  { %883 = vmatpush1.bf16.msra.mxu0 %v882_v40  ;;  %v264_v29 = vld [vmem:[#allocation7 + $0x270] sm:$0xff]  ;;  %v273_v31 = vld [vmem:[#allocation7 + $0x2b8] sm:$0xff]  ;;  %v848_v33 = vpack.c.bf16 %v287_v26, %v283_v25  ;;  %v282_v34 = vld [vmem:[#allocation7 + $0x300] sm:$0xff] }
  0x70   :  { %885 = vmatprep.subr.bf16.mxu0 %v884_v43  ;;  %v286_v35 = vld [vmem:[#allocation7 + $0x320] sm:$0xff]  ;;  %v902_v36 = vpack.c.bf16 %v264_v29, %v260_v28  ;;  %v291_v37 = vld [vmem:[#allocation7 + $0x348] sm:$0xff]  ;;  %v904_v39 = vpack.c.bf16 %v273_v31, %v269_v30  ;;  %v268_v40 = vld [vmem:[#allocation7 + $0x290] sm:$0xff] }
  0x71   :  { %831 = vmatpush1.bf16.msra.mxu1 %v830_v48  ;;  %v295_v38 = vld [vmem:[#allocation7 + $0x368] sm:$0xff]  ;;  %v272_v41 = vld [vmem:[#allocation7 + $0x2b0] sm:$0xff]  ;;  %v277_v42 = vld [vmem:[#allocation7 + $0x2d8] sm:$0xff]  ;;  %v850_v44 = vpack.c.bf16 %v286_v35, %v282_v34 }
  0x72   :  { %833 = vmatprep.subr.bf16.mxu1 %v832_v49  ;;  %v281_v43 = vld [vmem:[#allocation7 + $0x2f8] sm:$0xff]  ;;  %v852_v45 = vpack.c.bf16 %v295_v38, %v291_v37  ;;  %v290_v46 = vld [vmem:[#allocation7 + $0x340] sm:$0xff]  ;;  %v906_v48 = vpack.c.bf16 %v272_v41, %v268_v40  ;;  %v299_v49 = vld [vmem:[#allocation7 + $0x388] sm:$0xff] }
  0x73   :  { %887 = vmatpush1.bf16.msra.mxu0 %v886_v52  ;;  %v294_v47 = vld [vmem:[#allocation7 + $0x360] sm:$0xff]  ;;  %v303_v50 = vld [vmem:[#allocation7 + $0x3a8] sm:$0xff]  ;;  %v908_v51 = vpack.c.bf16 %v281_v43, %v277_v42  ;;  %v276_v52 = vld [vmem:[#allocation7 + $0x2d0] sm:$0xff] }
  0x74   :  { %889 = vmatprep.subr.bf16.mxu0 %v888_v55  ;;  %v280_v53 = vld [vmem:[#allocation7 + $0x2f0] sm:$0xff]  ;;  %v285_v54 = vld [vmem:[#allocation7 + $0x318] sm:$0xff]  ;;  %v854_v56 = vpack.c.bf16 %v294_v47, %v290_v46  ;;  %v856_v57 = vpack.c.bf16 %v303_v50, %v299_v49  ;;  %v307_v14 = vld [vmem:[#allocation7 + $0x3c8] sm:$0xff] }
  0x75   :  { %835 = vmatpush1.bf16.msra.mxu1 %v834_v60  ;;  %v289_v55 = vld [vmem:[#allocation7 + $0x338] sm:$0xff]  ;;  %v910_v58 = vpack.c.bf16 %v280_v53, %v276_v52  ;;  %v284_v60 = vld [vmem:[#allocation7 + $0x310] sm:$0xff]  ;;  %v306_v19 = vld [vmem:[#allocation7 + $0x3c0] sm:$0xff] }
  0x76   :  { %837 = vmatprep.subr.bf16.mxu1 %v836_v61  ;;  %v912_v59 = vpack.c.bf16 %v289_v55, %v285_v54  ;;  %v288_v61 = vld [vmem:[#allocation7 + $0x330] sm:$0xff]  ;;  %v293_v62 = vld [vmem:[#allocation7 + $0x358] sm:$0xff]  ;;  %v498_v26 = vld [vmem:[#allocation8 + $0x80] sm:$0xff] }
  0x77   :  { %891 = vmatpush1.bf16.msra.mxu0 %v890_v0  ;;  %v297_v63 = vld [vmem:[#allocation7 + $0x378] sm:$0xff]  ;;  %v914_v0 = vpack.c.bf16 %v288_v61, %v284_v60  ;;  %v292_v2 = vld [vmem:[#allocation7 + $0x350] sm:$0xff]  ;;  %v530_v28 = vld [vmem:[#allocation8 + $0x180] sm:$0xff] }
  0x78   :  { %893 = vmatprep.subr.bf16.mxu0 %v892_v3  ;;  %v916_v1 = vpack.c.bf16 %v297_v63, %v293_v62  ;;  %v296_v3 = vld [vmem:[#allocation7 + $0x370] sm:$0xff]  ;;  %v301_v4 = vld [vmem:[#allocation7 + $0x398] sm:$0xff]  ;;  %v531_v30 = vld [vmem:[#allocation8 + $0x188] sm:$0xff] }
  0x79   :  { %839 = vmatpush1.bf16.msra.mxu1 %v838_v8  ;;  %v305_v5 = vld [vmem:[#allocation7 + $0x3b8] sm:$0xff]  ;;  %v918_v6 = vpack.c.bf16 %v296_v3, %v292_v2  ;;  %v298_v8 = vld [vmem:[#allocation7 + $0x380] sm:$0xff]  ;;  %v300_v10 = vld [vmem:[#allocation7 + $0x390] sm:$0xff]  ;;  %v960_v31 = vpack.c.bf16 %v531_v30, %v530_v28 }
  0x7a   :  { %841 = vmatprep.subr.bf16.mxu1 %v840_v9  ;;  %v920_v7 = vpack.c.bf16 %v305_v5, %v301_v4  ;;  %v302_v9 = vld [vmem:[#allocation7 + $0x3a0] sm:$0xff]  ;;  %v309_v16 = vld [vmem:[#allocation7 + $0x3d8] sm:$0xff]  ;;  %v308_v23 = vld [vmem:[#allocation7 + $0x3d0] sm:$0xff] }
  0x7b   :  { %895 = vmatpush1.bf16.msra.mxu0 %v894_v12  ;;  %v858_v11 = vpack.c.bf16 %v302_v9, %v298_v8  ;;  %v304_v12 = vld [vmem:[#allocation7 + $0x3b0] sm:$0xff]  ;;  %v313_v18 = vld [vmem:[#allocation7 + $0x3f8] sm:$0xff]  ;;  %v482_v40 = vld [vmem:[#allocation8] sm:$0xff] }
  0x7c   :  { %897 = vmatprep.subr.bf16.mxu0 %v896_v15  ;;  %v922_v13 = vpack.c.bf16 %v304_v12, %v300_v10  ;;  %v311_v15 = vld [vmem:[#allocation7 + $0x3e8] sm:$0xff]  ;;  %v97_v35 = vld [vmem:[%s1261_s2] sm:$0x3]  ;;  %v500_v46 = vld [vmem:[#allocation8 + $0x90] sm:$0xff] }
  0x7d   :  { %843 = vmatpush1.bf16.msra.mxu1 %v842_v20  ;;  %v860_v17 = vpack.c.bf16 %v311_v15, %v307_v14  ;;  %v310_v20 = vld [vmem:[#allocation7 + $0x3e0] sm:$0xff]  ;;  %v483_v41 = vld [vmem:[#allocation8 + $0x8] sm:$0xff]  ;;  %v532_v49 = vld [vmem:[#allocation8 + $0x190] sm:$0xff] }
  0x7e   :  { %845 = vmatprep.subr.bf16.mxu1 %v844_v21  ;;  %v924_v21 = vpack.c.bf16 %v313_v18, %v309_v16  ;;  %v862_v22 = vpack.c.bf16 %v310_v20, %v306_v19  ;;  %v533_v50 = vld [vmem:[#allocation8 + $0x198] sm:$0xff]  ;;  %v930_v52 = vpack.c.bf16 %v483_v41, %v482_v40  ;;  %v484_v54 = vld [vmem:[#allocation8 + $0x10] sm:$0xff]  ;;  %v502_v61 = vld [vmem:[#allocation8 + $0xa0] sm:$0xff] }
  0x7f   :  { %899 = vmatpush1.bf16.msra.mxu0 %v898_v24  ;;  %v312_v24 = vld [vmem:[#allocation7 + $0x3f0] sm:$0xff]  ;;  %v485_v55 = vld [vmem:[#allocation8 + $0x18] sm:$0xff]  ;;  %v503_v62 = vld [vmem:[#allocation8 + $0xa8] sm:$0xff] }
  0x80   :  { %901 = vmatprep.subr.bf16.mxu0 %v900_v27  ;;  %v926_v25 = vpack.c.bf16 %v312_v24, %v308_v23  ;;  %v499_v27 = vld [vmem:[#allocation8 + $0x88] sm:$0xff]  ;;  %v517_v60 = vld [vmem:[#allocation8 + $0x118] sm:$0xff]  ;;  %v534_v63 = vld [vmem:[#allocation8 + $0x1a0] sm:$0xff]  ;;  %v936_v5 = vpack.c.bf16 %v503_v62, %v502_v61 }
  0x81   :  { %847 = vmatpush1.bf16.msra.mxu1 %v846_v32  ;;  %v928_v29 = vpack.c.bf16 %v499_v27, %v498_v26  ;;  %v99_v32 = vlaneseq  ;;  %v486_v3 = vld [vmem:[#allocation8 + $0x20] sm:$0xff]  ;;  %v487_v4 = vld [vmem:[#allocation8 + $0x28] sm:$0xff]  ;;  %v504_v9 = vld [vmem:[#allocation8 + $0xb0] sm:$0xff] }
  0x82   :  { %849 = vmatprep.subr.bf16.mxu1 %v848_v33  ;;  %v519_v8 = vld [vmem:[#allocation8 + $0x128] sm:$0xff]  ;;  %v505_v10 = vld [vmem:[#allocation8 + $0xb8] sm:$0xff]  ;;  %v488_v15 = vld [vmem:[#allocation8 + $0x30] sm:$0xff] }
  0x83   :  { %903 = vmatpush1.bf16.msra.mxu0 %v902_v36  ;;  %v1224_v33 = vshrl.u32 %v99_v32, 7  ;;  %v537_v12 = vld [vmem:[#allocation8 + $0x1b8] sm:$0xff]  ;;  %v520_v19 = vld [vmem:[#allocation8 + $0x130] sm:$0xff]  ;;  %v538_v23 = vld [vmem:[#allocation8 + $0x1c0] sm:$0xff] }
  0x84   :  { %905 = vmatprep.subr.bf16.mxu0 %v904_v39  ;;  %v489_v16 = vld [vmem:[#allocation8 + $0x38] sm:$0xff]  ;;  %v539_v24 = vld [vmem:[#allocation8 + $0x1c8] sm:$0xff]  ;;  %v490_v27 = vld [vmem:[#allocation8 + $0x40] sm:$0xff] }
  0x85   :  { %851 = vmatpush1.bf16.msra.mxu1 %v850_v44  ;;  %v101_v34 = vsub.s32 0, %v1224_v33  ;;  %v105_v36 = vsub.s32 1, %v1224_v33  ;;  %v514_v44 = vld [vmem:[#allocation8 + $0x100] sm:$0xff]  ;;  %v521_v20 = vld [vmem:[#allocation8 + $0x138] sm:$0xff]  ;;  %v491_v28 = vld [vmem:[#allocation8 + $0x48] sm:$0xff]  ;;  %v976_v30 = vpack.c.bf16 %v539_v24, %v538_v23 }
  0x86   :  { %853 = vmatprep.subr.bf16.mxu1 %v852_v45  ;;  %v515_v45 = vld [vmem:[#allocation8 + $0x108] sm:$0xff]  ;;  %v974_v26 = vpack.c.bf16 %v521_v20, %v520_v19  ;;  %v946_v40 = vpack.c.bf16 %v491_v28, %v490_v27  ;;  %v512_v62 = vld [vmem:[#allocation8 + $0xf0] sm:$0xff] }
  0x87   :  { %907 = vmatpush1.bf16.msra.mxu0 %v906_v48  ;;  %v102_v37 = vrot.slane %v97_v35, %v101_v34  ;;  %v106_v38 = vrot.slane %v97_v35, %v105_v36  ;;  %v501_v48 = vld [vmem:[#allocation8 + $0x98] sm:$0xff]  ;;  %v962_v53 = vpack.c.bf16 %v515_v45, %v514_v44  ;;  %v523_v32 = vld [vmem:[#allocation8 + $0x148] sm:$0xff]  ;;  %v508_v35 = vld [vmem:[#allocation8 + $0xd0] sm:$0xff] }
  0x88   :  { %909 = vmatprep.subr.bf16.mxu0 %v908_v51 }
  0x89   :  { %855 = vmatpush1.bf16.msra.mxu1 %v854_v56 }
  0x8a   :  { %857 = vmatprep.subr.bf16.mxu1 %v856_v57  ;;  %v932_v57 = vpack.c.bf16 %v501_v48, %v500_v46  ;;  %v524_v46 = vld [vmem:[#allocation8 + $0x150] sm:$0xff]  ;;  %v510_v48 = vld [vmem:[#allocation8 + $0xe0] sm:$0xff] }
  0x8b   :  { %911 = vmatpush1.bf16.msra.mxu0 %v910_v58  ;;  %v964_v58 = vpack.c.bf16 %v533_v50, %v532_v49  ;;  %v511_v49 = vld [vmem:[#allocation8 + $0xe8] sm:$0xff]  ;;  %v542_v50 = vld [vmem:[#allocation8 + $0x1e0] sm:$0xff] }
  0x8c   :  { %913 = vmatprep.subr.bf16.mxu0 %v912_v59  ;;  %v516_v59 = vld [vmem:[#allocation8 + $0x110] sm:$0xff] }
  0x8d   :  { %859 = vmatpush1.bf16.msra.mxu1 %v858_v11  ;;  %v966_v2 = vpack.c.bf16 %v517_v60, %v516_v59  ;;  %v536_v11 = vld [vmem:[#allocation8 + $0x1b0] sm:$0xff]  ;;  %v527_v60 = vld [vmem:[#allocation8 + $0x168] sm:$0xff] }
  0x8e   :  { %861 = vmatprep.subr.bf16.mxu1 %v860_v17  ;;  %v940_v17 = vpack.c.bf16 %v505_v10, %v504_v9  ;;  %v972_v18 = vpack.c.bf16 %v537_v12, %v536_v11  ;;  %v326_v10 = vsub.s32 2, %v1224_v33  ;;  %v314_v11 = vld [vmem:[%s1263_s4] sm:$0xf]  ;;  %v330_v12 = vsub.s32 3, %v1224_v33 }
  0x8f   :  { %915 = vmatpush1.bf16.msra.mxu0 %v914_v0  ;;  %v535_v0 = vld [vmem:[#allocation8 + $0x1a8] sm:$0xff] }
  0x90   :  { %917 = vmatprep.subr.bf16.mxu0 %v916_v1  ;;  %v934_v1 = vpack.c.bf16 %v485_v55, %v484_v54  ;;  %v952_v54 = vpack.c.bf16 %v511_v49, %v510_v48 }
  0x91   :  { %863 = vmatpush1.bf16.msra.mxu1 %v862_v22  ;;  %v507_v22 = vld [vmem:[#allocation8 + $0xc8] sm:$0xff] }
  0x92   :  { %929 = vmatprep.subr.bf16.mxu1 %v928_v29 }
  0x93   :  { %919 = vmatpush1.bf16.msra.mxu0 %v918_v6  ;;  %v968_v6 = vpack.c.bf16 %v535_v0, %v534_v63  ;;  %v513_v63 = vld [vmem:[#allocation8 + $0xf8] sm:$0xff]  ;;  %v544_v0 = vld [vmem:[#allocation8 + $0x1f0] sm:$0xff] }
  0x94   :  { %921 = vmatprep.subr.bf16.mxu0 %v920_v7  ;;  %v518_v7 = vld [vmem:[#allocation8 + $0x120] sm:$0xff] }
  0x95   :  { %v970_v14 = vpack.c.bf16 %v519_v8, %v518_v7  ;;  %v528_v7 = vld [vmem:[#allocation8 + $0x170] sm:$0xff]  ;;  %v529_v8 = vld [vmem:[#allocation8 + $0x178] sm:$0xff] }
  0x96   :  { %v990_v9 = vpack.c.bf16 %v529_v8, %v528_v7 }
  0x97   :  { %923 = vmatpush1.bf16.msra.mxu0 %v922_v13  ;;  %v938_v13 = vpack.c.bf16 %v487_v4, %v486_v3  ;;  %v496_v3 = vld [vmem:[#allocation8 + $0x70] sm:$0xff]  ;;  %v497_v4 = vld [vmem:[#allocation8 + $0x78] sm:$0xff] }
  0x98   :  { %925 = vmatprep.subr.bf16.mxu0 %v924_v21  ;;  %v506_v21 = vld [vmem:[#allocation8 + $0xc0] sm:$0xff] }
  0x99   :  { %v944_v29 = vpack.c.bf16 %v507_v22, %v506_v21 }
  0x9b   :  { %927 = vmatpush1.bf16.msra.mxu0 %v926_v25  ;;  %v942_v25 = vpack.c.bf16 %v489_v16, %v488_v15  ;;  %v323_v15 = vrot.slane %v314_v11, %v105_v36  ;;  %v331_v16 = vrot.slane %v314_v11, %v330_v12  ;;  %v713_v36 = vld [vmem:[%s1265_s6] ss:$0 sm:$0xff] }
  0x9c   :  { %961 = vmatprep.subr.bf16.mxu0 %v960_v31  ;;  %v522_v31 = vld [vmem:[#allocation8 + $0x140] sm:$0xff] }
  0x9d   :  { %v978_v41 = vpack.c.bf16 %v523_v32, %v522_v31 }
 0x131   :  { %v179_v39 = vpop.f32.mrb[0].mxu0 }
 0x132   :  { %v180_v42 = vadd.f32 %v179_v39, %v102_v37  ;;  %v181_v43 = vpop.f32.mrb[1].mxu0  ;;  %v509_v37 = vld [vmem:[#allocation8 + $0xd8] sm:$0xff] }
 0x133   :  { %v182_v47 = vadd.f32 %v181_v43, %v106_v38  ;;  %v540_v38 = vld [vmem:[#allocation8 + $0x1d0] sm:$0xff]  ;;  %v541_v39 = vld [vmem:[#allocation8 + $0x1d8] sm:$0xff]  ;;  %v948_v44 = vpack.c.bf16 %v509_v37, %v508_v35 }
 0x134   :  { %v184_v56 = vmax.f32 %v180_v42, 0.0  ;;  %v492_v42 = vld [vmem:[#allocation8 + $0x50] sm:$0xff]  ;;  %v493_v43 = vld [vmem:[#allocation8 + $0x58] sm:$0xff]  ;;  %v980_v45 = vpack.c.bf16 %v541_v39, %v540_v38 }
 0x135   :  { %v185_v51 = vmax.f32 %v182_v47, 0.0  ;;  %v525_v47 = vld [vmem:[#allocation8 + $0x158] sm:$0xff] }
 0x137   :  { %400 = vmatprep.mubr.f32.mxu1 %v185_v51  ;;  %471 = vmatprep.mubr.f32.mxu0 %v185_v51  ;;  %v543_v51 = vld [vmem:[#allocation8 + $0x1e8] sm:$0xff] }
 0x138   :  { %401 = vmatmul.mubr.f32.vlgmr.msra.gmra.mrb[0].mxu1 %v184_v56  ;;  %472 = vmatmul.mubr.f32.vlgmr.msra.gmra.mrb[2].mxu0 %v184_v56  ;;  %v984_v55 = vpack.c.bf16 %v543_v51, %v542_v50  ;;  %v494_v56 = vld [vmem:[#allocation8 + $0x60] sm:$0xff] }
 0x139   :  { %931 = vmatpush3.bf16.msra.mxu1 %v930_v52  ;;  %963 = vmatpush3.bf16.msra.mxu0 %v962_v53  ;;  %v950_v52 = vpack.c.bf16 %v493_v43, %v492_v42  ;;  %v982_v53 = vpack.c.bf16 %v525_v47, %v524_v46 }
 0x13a   :  { %933 = vmatprep.subr.bf16.mxu1 %v932_v57  ;;  %965 = vmatprep.subr.bf16.mxu0 %v964_v58  ;;  %v495_v57 = vld [vmem:[#allocation8 + $0x68] sm:$0xff]  ;;  %v526_v58 = vld [vmem:[#allocation8 + $0x160] sm:$0xff] }
 0x13b   :  { %v954_v59 = vpack.c.bf16 %v495_v57, %v494_v56  ;;  %v986_v61 = vpack.c.bf16 %v527_v60, %v526_v58 }
 0x13d   :  { %935 = vmatpush3.bf16.msra.mxu1 %v934_v1  ;;  %967 = vmatpush3.bf16.msra.mxu0 %v966_v2  ;;  %v956_v1 = vpack.c.bf16 %v513_v63, %v512_v62  ;;  %v545_v2 = vld [vmem:[#allocation8 + $0x1f8] sm:$0xff] }
 0x13e   :  { %937 = vmatprep.subr.bf16.mxu1 %v936_v5  ;;  %969 = vmatprep.subr.bf16.mxu0 %v968_v6  ;;  %v988_v5 = vpack.c.bf16 %v545_v2, %v544_v0  ;;  %v958_v6 = vpack.c.bf16 %v497_v4, %v496_v3 }
 0x141   :  { %939 = vmatpush3.bf16.msra.mxu1 %v938_v13  ;;  %971 = vmatpush3.bf16.msra.mxu0 %v970_v14  ;;  %v319_v13 = vrot.slane %v314_v11, %v101_v34  ;;  %v327_v14 = vrot.slane %v314_v11, %v326_v10 }
 0x142   :  { %941 = vmatprep.subr.bf16.mxu1 %v940_v17  ;;  %973 = vmatprep.subr.bf16.mxu0 %v972_v18 }
 0x145   :  { %943 = vmatpush3.bf16.msra.mxu1 %v942_v25  ;;  %975 = vmatpush3.bf16.msra.mxu0 %v974_v26 }
 0x146   :  { %945 = vmatprep.subr.bf16.mxu1 %v944_v29  ;;  %977 = vmatprep.subr.bf16.mxu0 %v976_v30 }
 0x149   :  { %947 = vmatpush3.bf16.msra.mxu1 %v946_v40  ;;  %979 = vmatpush3.bf16.msra.mxu0 %v978_v41 }
 0x14a   :  { %949 = vmatprep.subr.bf16.mxu1 %v948_v44  ;;  %981 = vmatprep.subr.bf16.mxu0 %v980_v45 }
 0x14d   :  { %951 = vmatpush3.bf16.msra.mxu1 %v950_v52  ;;  %983 = vmatpush3.bf16.msra.mxu0 %v982_v53 }
 0x14e   :  { %953 = vmatprep.subr.bf16.mxu1 %v952_v54  ;;  %985 = vmatprep.subr.bf16.mxu0 %v984_v55 }
 0x151   :  { %955 = vmatpush3.bf16.msra.mxu1 %v954_v59  ;;  %987 = vmatpush3.bf16.msra.mxu0 %v986_v61 }
 0x152   :  { %957 = vmatprep.subr.bf16.mxu1 %v956_v1  ;;  %989 = vmatprep.subr.bf16.mxu0 %v988_v5 }
 0x155   :  { %959 = vmatpush3.bf16.msra.mxu1 %v958_v6  ;;  %991 = vmatpush3.bf16.msra.mxu0 %v990_v9 }
 0x20b   :  { %v402_v17 = vpop.f32.mrb[0].mxu1  ;;  %v473_v18 = vpop.f32.mrb[2].mxu0 }
 0x20c   :  { %v403_v19 = vadd.f32 %v402_v17, %v319_v13  ;;  %v474_v20 = vadd.f32 %v473_v18, %v327_v14  ;;  %v404_v21 = vpop.f32.mrb[1].mxu1  ;;  %v475_v22 = vpop.f32.mrb[3].mxu0 }
 0x20d   :  { %v405_v23 = vadd.f32 %v404_v21, %v323_v15  ;;  %v476_v24 = vadd.f32 %v475_v22, %v331_v16 }
 0x20e   :  { %v478_v27 = vmax.f32 %v403_v19, 0.0  ;;  %v480_v28 = vmax.f32 %v474_v20, 0.0 }
 0x20f   :  { %v479_v25 = vmax.f32 %v405_v23, 0.0  ;;  %v481_v26 = vmax.f32 %v476_v24, 0.0 }
 0x211   :  { %617 = vmatprep.mubr.f32.mxu1 %v479_v25  ;;  %687 = vmatprep.mubr.f32.mxu0 %v481_v26 }
 0x212   :  { %618 = vmatmul.mubr.f32.vlgmr.msra.gmra.mrb[2].mxu1 %v478_v27  ;;  %688 = vmatmul.mubr.f32.vlgmr.msra.gmra.mrb[4].mxu0 %v480_v28 }
 0x2e5   :  { %v746_v34 = vpop.f32.mrb[2].mxu1  ;;  %v781_v33 = vpop.f32.mrb[4].mxu0 }
 0x2e6   :  { %v747_v29 = vpop.f32.mrb[3].mxu1  ;;  %v782_v30 = vpop.f32.mrb[5].mxu0 }
 0x2e7   :  { %v748_v31 = vadd.f32 %v747_v29, %v746_v34  ;;  %v783_v32 = vadd.f32 %v782_v30, %v781_v33 }
 0x2e9   :  { %v620_v35 = vadd.f32 %v748_v31, %v713_v36 }
 0x2eb   :  { %v690_v37 = vadd.f32 %v783_v32, %v620_v35 }
 0x2ed   :  { %1004 = vtanh.f32 %v690_v37 }
 0x2f7   :  { %v1005_v38 = vpop.eup %1004 }
 0x2f8   :  { %694 = vst [vmem:[#allocation10] sm:$0xff] %v1005_v38 }
 0x2f9   :  { %1105 = shalt.err (!%p1102_p8)
}
 0x2fa   :  { %s1106_s12 = scalar_lea.hbm %s1266_s7, 128 }
 0x2fb   :  { %p1107_p9 = scmp.ne.s32.totalorder %s1266_s7, %s1106_s12  ;;  %p1110_p10 = scmp.lt.u32.totalorder %s1106_s12, %s1266_s7 }
 0x2fd   :  { %p1112_p11 = pnand %p1110_p10, %p1107_p9 }
 0x2ff   :  { %1115 = shalt.err (!%p1112_p11)
}
 0x300   :  { %704 = dma.vmem_to_hbm [thread:$0]  %s702_s9, 128, %s1266_s7, [#allocation4]  }
 0x301   :  { %1122 = dma.done.wait [#allocation4], 128  }
 0x302   :  { %1123 = vsyncadd [#allocation4], 4294967168 }
 0x303   :  { %708 = vsyncpa [#allocation3], 1 }
 0x304   :  { %709 = vsyncpa [#allocation6], 1 }
 0x305   :  { %710 = vsyncpa [#allocation9], 1 }
 0x306   :  { %711 = vsyncpa [#allocation4], 1 }

</bundles_post_ra>
